<compile_context>
chip_gen: v5e
topology: v5e:2x2
jax: 0.10.0
libtpu: 0.0.40
codegen_flags: <defaults>
</compile_context>

<pallas_src>
import math

import jax
import jax.numpy as jnp
from jax.experimental import pallas as pl
from jax.experimental.pallas import tpu as pltpu


def _round_up(x, m):
    return (x + m - 1) // m * m


def mlp_kernel(x_ref, w1_ref, b1_ref, w2_ref, b2_ref, w3_ref, b3_ref, out_ref):
    # x_ref / w*_ref hold MXU operands (bf16 or f32); b*_ref are f32.
    x = x_ref[...]

    # Layer 1: MXU matmul with f32 accumulation, bias+ReLU on the VPU in f32.
    h1 = jnp.dot(x, w1_ref[...], preferred_element_type=jnp.float32) + b1_ref[...]
    h1 = jnp.maximum(h1, 0.0)

    # Layer 2: cast only the MXU operand; tanh (EUP) stays in f32.
    h2 = jnp.dot(h1.astype(w2_ref.dtype), w2_ref[...],
                 preferred_element_type=jnp.float32) + b2_ref[...]
    h2 = jnp.tanh(h2)

    # Layer 3 + sigmoid (EUP), f32 math, lane-dense store.
    o = jnp.dot(h2.astype(w3_ref.dtype), w3_ref[...],
                preferred_element_type=jnp.float32) + b3_ref[...]
    out_ref[...] = jax.nn.sigmoid(o).astype(out_ref.dtype)


def neural_network_forward(x, params, *, block_b=512, mxu_dtype=jnp.bfloat16):
    """x: (B, input_dim) float32.  params: dict of pre-transposed weights/biases.

    mxu_dtype: dtype fed to the MXU (bf16 recommended on v6e/v7x; accumulation
    is always f32, elementwise math is always f32).
    """
    w1, b1 = params["w1"], params["b1"]
    w2, b2 = params["w2"], params["b2"]
    w3, b3 = params["w3"], params["b3"]

    B, d_in = x.shape
    h1 = w1.shape[1]
    h2 = w2.shape[1]
    d_out = w3.shape[1]

    # --- lane-dense padding of all feature dims to multiples of 128 ---
    d_in_p = _round_up(d_in, 128)
    h1_p = _round_up(h1, 128)
    h2_p = _round_up(h2, 128)
    d_out_p = _round_up(d_out, 128)

    # --- batch tile selection (pad batch instead of asserting divisibility) ---
    B8 = _round_up(B, 8)                      # sublane multiple
    bb = _round_up(min(block_b, B8), 8)
    # Give the 'parallel' batch axis >= 2 grid steps when possible so v7x's
    # two TensorCores both get work.
    if B8 // bb < 2 and bb >= 16:
        bb = _round_up(bb // 2, 8)
    B_p = _round_up(B8, bb)

    f32 = jnp.float32
    xp = jnp.zeros((B_p, d_in_p), f32).at[:B, :d_in].set(x.astype(f32))
    w1p = jnp.zeros((d_in_p, h1_p), f32).at[:d_in, :h1].set(w1)
    w2p = jnp.zeros((h1_p, h2_p), f32).at[:h1, :h2].set(w2)
    w3p = jnp.zeros((h2_p, d_out_p), f32).at[:h2, :d_out].set(w3)
    b1p = jnp.zeros((1, h1_p), f32).at[:, :h1].set(b1.reshape(1, -1))
    b2p = jnp.zeros((1, h2_p), f32).at[:, :h2].set(b2.reshape(1, -1))
    b3p = jnp.zeros((1, d_out_p), f32).at[:, :d_out].set(b3.reshape(1, -1))

    # MXU operands in the requested dtype (bf16 halves DMA bytes and doubles
    # MXU rate on v6e/v7x); biases stay f32.
    xp = xp.astype(mxu_dtype)
    w1p = w1p.astype(mxu_dtype)
    w2p = w2p.astype(mxu_dtype)
    w3p = w3p.astype(mxu_dtype)

    grid = (B_p // bb,)

    op_itemsize = jnp.dtype(mxu_dtype).itemsize
    cost = pl.CostEstimate(
        flops=2 * B_p * (d_in_p * h1_p + h1_p * h2_p + h2_p * d_out_p),
        transcendentals=B_p * (h2_p + d_out_p),           # tanh + sigmoid
        bytes_accessed=(B_p * d_in_p + d_in_p * h1_p + h1_p * h2_p
                        + h2_p * d_out_p) * op_itemsize
                       + (h1_p + h2_p + d_out_p) * 4      # biases (f32)
                       + B_p * d_out_p * 4,               # output (f32)
    )

    # Per-step VMEM is tiny (a few hundred KiB at bb=512 with double-buffered
    # activation tiles), so the default scoped VMEM limit is fine on
    # v5e/v6e/v7x.  If hidden dims are scaled up, set
    # pltpu.CompilerParams(vmem_limit_bytes=...) against v7x's 64 MiB budget
    # and shrink bb before giving up weight residency.
    out = pl.pallas_call(
        mlp_kernel,
        out_shape=jax.ShapeDtypeStruct((B_p, d_out_p), jnp.float32),
        grid_spec=pltpu.PrefetchScalarGridSpec(
            num_scalar_prefetch=0,
            grid=grid,
            in_specs=[
                # batch tile of activations
                pl.BlockSpec((bb, d_in_p), lambda i: (i, 0)),
                # weights / biases: fully resident, same block every grid step
                pl.BlockSpec((d_in_p, h1_p), lambda i: (0, 0)),
                pl.BlockSpec((1, h1_p), lambda i: (0, 0)),
                pl.BlockSpec((h1_p, h2_p), lambda i: (0, 0)),
                pl.BlockSpec((1, h2_p), lambda i: (0, 0)),
                pl.BlockSpec((h2_p, d_out_p), lambda i: (0, 0)),
                pl.BlockSpec((1, d_out_p), lambda i: (0, 0)),
            ],
            out_specs=pl.BlockSpec((bb, d_out_p), lambda i: (i, 0)),
        ),
        compiler_params=pltpu.CompilerParams(
            dimension_semantics=("parallel",),
        ),
        cost_estimate=cost,
    )(xp, w1p, b1p, w2p, b2p, w3p, b3p)

    # strip batch + lane padding
    return out[:B, :d_out]


def xavier_uniform(key, fan_in, fan_out, dtype=jnp.float32):
    # Matches torch.nn.init.xavier_uniform_ (gain=1).
    limit = math.sqrt(6.0 / (fan_in + fan_out))
    # PyTorch weight shape is (out, in); generate (in, out) directly (transposed).
    return jax.random.uniform(key, (fan_in, fan_out), dtype=dtype,
                              minval=-limit, maxval=limit)


def init_params(key, input_dim, hidden_dim1, hidden_dim2, output_dim):
    k1, k2, k3 = jax.random.split(key, 3)
    return {
        "w1": xavier_uniform(k1, input_dim, hidden_dim1),
        "b1": jnp.zeros((1, hidden_dim1), jnp.float32),
        "w2": xavier_uniform(k2, hidden_dim1, hidden_dim2),
        "b2": jnp.zeros((1, hidden_dim2), jnp.float32),
        "w3": xavier_uniform(k3, hidden_dim2, output_dim),
        "b3": jnp.zeros((1, output_dim), jnp.float32),
    }


def reference_forward(x, params):
    h1 = jnp.maximum(x @ params["w1"] + params["b1"], 0.0)
    h2 = jnp.tanh(h1 @ params["w2"] + params["b2"])
    return jax.nn.sigmoid(h2 @ params["w3"] + params["b3"])


if __name__ == "__main__":
    # Small shapes consistent with the module's forward: x is (batch, input_dim).
    batch = 64
    input_dim, hidden_dim1, hidden_dim2, output_dim = 32, 64, 32, 16

    key = jax.random.PRNGKey(0)
    k_x, k_p = jax.random.split(key)

    x = jax.random.normal(k_x, (batch, input_dim), dtype=jnp.float32)
    params = init_params(k_p, input_dim, hidden_dim1, hidden_dim2, output_dim)

    ref = reference_forward(x, params)

    # f32-operand path: tight check against the JAX reference.
    out_f32 = neural_network_forward(x, params, mxu_dtype=jnp.float32)
    out_f32 = jax.block_until_ready(out_f32)
    assert out_f32.shape == (batch, output_dim)
    assert jnp.allclose(out_f32, ref, atol=1e-5, rtol=1e-5), "f32 mismatch vs reference"

    # bf16-MXU-operand path (the fast path on v6e/v7x): f32 accumulation keeps
    # the error small; sigmoid output is in (0,1) so absolute tolerance is safe.
    out_bf16 = neural_network_forward(x, params, mxu_dtype=jnp.bfloat16)
    out_bf16 = jax.block_until_ready(out_bf16)
    assert out_bf16.shape == (batch, output_dim)
    assert jnp.allclose(out_bf16, ref, atol=2e-2, rtol=2e-2), "bf16 mismatch vs reference"

    print("KERNEL_OK")
</pallas_src>

<mosaic_0001>
module attributes {stable_mosaic.version = 11 : i64} {
  func.func @mlp_kernel(%arg0: i32, %arg1: memref<32x128xf32, #tpu.memory_space<vmem>>, %arg2: memref<128x128xf32, #tpu.memory_space<vmem>>, %arg3: memref<1x128xf32, #tpu.memory_space<vmem>>, %arg4: memref<128x128xf32, #tpu.memory_space<vmem>>, %arg5: memref<1x128xf32, #tpu.memory_space<vmem>>, %arg6: memref<128x128xf32, #tpu.memory_space<vmem>>, %arg7: memref<1x128xf32, #tpu.memory_space<vmem>>, %arg8: memref<32x128xf32, #tpu.memory_space<vmem>>) attributes {dimension_semantics = [#tpu.dimension_semantics<parallel>], iteration_bounds = array<i64: 2>, scalar_prefetch = 0 : i64, scratch_operands = 0 : i64, tpu.core_type = #tpu.core_type<tc>, window_params = [{transform_indices = @transform_0, window_bounds = array<i64: 32, 128>}, {pipeline_mode = #tpu.pipeline_mode<synchronous>, transform_indices = @transform_1, window_bounds = array<i64: 128, 128>}, {pipeline_mode = #tpu.pipeline_mode<synchronous>, transform_indices = @transform_2, window_bounds = array<i64: 1, 128>}, {pipeline_mode = #tpu.pipeline_mode<synchronous>, transform_indices = @transform_3, window_bounds = array<i64: 128, 128>}, {pipeline_mode = #tpu.pipeline_mode<synchronous>, transform_indices = @transform_4, window_bounds = array<i64: 1, 128>}, {pipeline_mode = #tpu.pipeline_mode<synchronous>, transform_indices = @transform_5, window_bounds = array<i64: 128, 128>}, {pipeline_mode = #tpu.pipeline_mode<synchronous>, transform_indices = @transform_6, window_bounds = array<i64: 1, 128>}, {transform_indices = @transform_7, window_bounds = array<i64: 32, 128>}]} {
    %c0 = arith.constant 0 : index
    %c0_0 = arith.constant 0 : index
    %0 = vector.load %arg1[%c0, %c0_0] : memref<32x128xf32, #tpu.memory_space<vmem>>, vector<32x128xf32>
    %c0_1 = arith.constant 0 : index
    %c0_2 = arith.constant 0 : index
    %1 = vector.load %arg2[%c0_1, %c0_2] : memref<128x128xf32, #tpu.memory_space<vmem>>, vector<128x128xf32>
    %cst = arith.constant dense<0.000000e+00> : vector<32x128xf32>
    %2 = tpu.matmul %0, %1, %cst {dimension_numbers = #tpu.dot_dimension_numbers<[1], [0], [0], [1], [0, 0, 1, 1], [], []>} : vector<32x128xf32>, vector<128x128xf32>, vector<32x128xf32> -> vector<32x128xf32>
    %c0_3 = arith.constant 0 : index
    %c0_4 = arith.constant 0 : index
    %3 = vector.load %arg3[%c0_3, %c0_4] : memref<1x128xf32, #tpu.memory_space<vmem>>, vector<1x128xf32>
    %4 = vector.broadcast %3 : vector<1x128xf32> to vector<32x128xf32>
    %5 = arith.addf %2, %4 : vector<32x128xf32>
    %cst_5 = arith.constant 0.000000e+00 : f32
    %6 = vector.broadcast %cst_5 : f32 to vector<32x128xf32>
    %7 = arith.maximumf %5, %6 : vector<32x128xf32>
    %c0_6 = arith.constant 0 : index
    %c0_7 = arith.constant 0 : index
    %8 = vector.load %arg4[%c0_6, %c0_7] : memref<128x128xf32, #tpu.memory_space<vmem>>, vector<128x128xf32>
    %cst_8 = arith.constant dense<0.000000e+00> : vector<32x128xf32>
    %9 = tpu.matmul %7, %8, %cst_8 {dimension_numbers = #tpu.dot_dimension_numbers<[1], [0], [0], [1], [0, 0, 1, 1], [], []>} : vector<32x128xf32>, vector<128x128xf32>, vector<32x128xf32> -> vector<32x128xf32>
    %c0_9 = arith.constant 0 : index
    %c0_10 = arith.constant 0 : index
    %10 = vector.load %arg5[%c0_9, %c0_10] : memref<1x128xf32, #tpu.memory_space<vmem>>, vector<1x128xf32>
    %11 = vector.broadcast %10 : vector<1x128xf32> to vector<32x128xf32>
    %12 = arith.addf %9, %11 : vector<32x128xf32>
    %13 = math.tanh %12 : vector<32x128xf32>
    %c0_11 = arith.constant 0 : index
    %c0_12 = arith.constant 0 : index
    %14 = vector.load %arg6[%c0_11, %c0_12] : memref<128x128xf32, #tpu.memory_space<vmem>>, vector<128x128xf32>
    %cst_13 = arith.constant dense<0.000000e+00> : vector<32x128xf32>
    %15 = tpu.matmul %13, %14, %cst_13 {dimension_numbers = #tpu.dot_dimension_numbers<[1], [0], [0], [1], [0, 0, 1, 1], [], []>} : vector<32x128xf32>, vector<128x128xf32>, vector<32x128xf32> -> vector<32x128xf32>
    %c0_14 = arith.constant 0 : index
    %c0_15 = arith.constant 0 : index
    %16 = vector.load %arg7[%c0_14, %c0_15] : memref<1x128xf32, #tpu.memory_space<vmem>>, vector<1x128xf32>
    %17 = vector.broadcast %16 : vector<1x128xf32> to vector<32x128xf32>
    %18 = arith.addf %15, %17 : vector<32x128xf32>
    %19 = arith.negf %18 : vector<32x128xf32>
    %20 = math.exp %19 : vector<32x128xf32>
    %cst_16 = arith.constant 1.000000e+00 : f32
    %21 = vector.broadcast %cst_16 : f32 to vector<32x128xf32>
    %22 = arith.addf %21, %20 : vector<32x128xf32>
    %23 = arith.divf %21, %22 : vector<32x128xf32>
    %c0_17 = arith.constant 0 : index
    %c0_18 = arith.constant 0 : index
    %24 = vector.load %arg8[%c0_17, %c0_18] : memref<32x128xf32, #tpu.memory_space<vmem>>, vector<32x128xf32>
    tpu.vector_store %arg8[%c0_17, %c0_18], %23 {strides = array<i32>} : memref<32x128xf32, #tpu.memory_space<vmem>>, vector<32x128xf32>,
    return
  }
  func.func @transform_0(%arg0: i32) -> (i32, i32) {
    %c0_i32 = arith.constant 0 : i32
    %c0_i32_0 = arith.constant 0 : i32
    return %arg0, %c0_i32 : i32, i32
  }
  func.func @transform_1(%arg0: i32) -> (i32, i32) {
    %c0_i32 = arith.constant 0 : i32
    %c0_i32_0 = arith.constant 0 : i32
    %c0_i32_1 = arith.constant 0 : i32
    return %c0_i32, %c0_i32_0 : i32, i32
  }
  func.func @transform_2(%arg0: i32) -> (i32, i32) {
    %c0_i32 = arith.constant 0 : i32
    %c0_i32_0 = arith.constant 0 : i32
    %c0_i32_1 = arith.constant 0 : i32
    return %c0_i32, %c0_i32_0 : i32, i32
  }
  func.func @transform_3(%arg0: i32) -> (i32, i32) {
    %c0_i32 = arith.constant 0 : i32
    %c0_i32_0 = arith.constant 0 : i32
    %c0_i32_1 = arith.constant 0 : i32
    return %c0_i32, %c0_i32_0 : i32, i32
  }
  func.func @transform_4(%arg0: i32) -> (i32, i32) {
    %c0_i32 = arith.constant 0 : i32
    %c0_i32_0 = arith.constant 0 : i32
    %c0_i32_1 = arith.constant 0 : i32
    return %c0_i32, %c0_i32_0 : i32, i32
  }
  func.func @transform_5(%arg0: i32) -> (i32, i32) {
    %c0_i32 = arith.constant 0 : i32
    %c0_i32_0 = arith.constant 0 : i32
    %c0_i32_1 = arith.constant 0 : i32
    return %c0_i32, %c0_i32_0 : i32, i32
  }
  func.func @transform_6(%arg0: i32) -> (i32, i32) {
    %c0_i32 = arith.constant 0 : i32
    %c0_i32_0 = arith.constant 0 : i32
    %c0_i32_1 = arith.constant 0 : i32
    return %c0_i32, %c0_i32_0 : i32, i32
  }
  func.func @transform_7(%arg0: i32) -> (i32, i32) {
    %c0_i32 = arith.constant 0 : i32
    %c0_i32_0 = arith.constant 0 : i32
    return %arg0, %c0_i32 : i32, i32
  }
}

</mosaic_0001>

<bundles_post_ra>
// kernel: tpu_custom_call.1
= control target key start
LH: loop header
LB: loop body
LE: loop exit
PB: predicated region body
PF: predicated region fallthrough
CT: control target
= control target key end

     0   :  { %s1297_s0 = inlined_call_operand.hbm [shape: f32[64,128], index: 0, kind: input, shape index: {}]   ;;  %s1298_s1 = inlined_call_operand.hbm [shape: f32[128,128], index: 1, kind: input, shape index: {}]   ;;  %s1299_s2 = inlined_call_operand.vmem [shape: f32[1,128], index: 2, kind: input, shape index: {}]   ;;  %s1300_s3 = inlined_call_operand.hbm [shape: f32[128,128], index: 3, kind: input, shape index: {}]   ;;  %s1301_s4 = inlined_call_operand.vmem [shape: f32[1,128], index: 4, kind: input, shape index: {}]   ;;  %s1302_s5 = inlined_call_operand.hbm [shape: f32[128,128], index: 5, kind: input, shape index: {}]   ;;  %s1303_s6 = inlined_call_operand.vmem [shape: f32[1,128], index: 6, kind: input, shape index: {}]   ;;  %s1304_s7 = inlined_call_operand.hbm [shape: f32[64,128], index: 7, kind: output, shape index: {}]  }
   0x1   :  { %1307 = sst [smem:[#allocation15_spill]] %s1298_s1 }
   0x2   :  { %12 = vsyncpa [#allocation3], 0 }
   0x3   :  { %14 = vsyncpa [#allocation3 + $0x1], 0 }
   0x4   :  { %15 = vsyncpa [#allocation6], 0 }
   0x5   :  { %16 = vsyncpa [#allocation9], 0 }
   0x6   :  { %17 = vsyncpa [#allocation4], 0 }
   0x7   :  { %19 = vsyncpa [#allocation4 + $0x1], 0  ;;  %s1101_s24 = smov 0   ;;  %s1103_s25 = smov 0  }
   0x8   :  { %s1105_s26 = smov 0   ;;  %s1107_s27 = smov 0  }
   0x9 LB: > { %s1122_s28 = sadd.s32 4294967295, %s1052_s27   ;;  %s708_s29 = sadd.s32 4294967294, %s1052_s27   ;;  %s1052_s27 = sphi %s1107_s27, %s1321_s27   ;;  %s1048_s26 = sphi %s1105_s26, %s1320_s26   ;;  %s1044_s25 = sphi %s1103_s25, %s1319_s25   ;;  %s1040_s24 = sphi %s1101_s24, %s1318_s24  }
   0xa   : > { %p45_p0 = scmp.ne.s32.totalorder %s1044_s25, %s1040_s24  ;;  %p46_p1 = scmp.eq.s32.totalorder %s1122_s28, 0 }
   0xb   : > { %p195_p2 = scmp.eq.s32.totalorder %s1122_s28, 1  ;;  %p201_p3 = scmp.eq.s32.totalorder %s708_s29, 1 }
   0xc   : > { %p1131_p4 = por %p46_p1, %p45_p0  ;;  %p709_p5 = scmp.ge.s32.totalorder %s1052_s27, 1 }
   0xd   : > { %p1136_p6 = por %p201_p3, %p45_p0  ;;  %p208_p7 = scmp.lt.s32.totalorder %s1052_s27, 3 }
   0xe   : > { %s1310_s1 = sld [smem:[#allocation15_spill]]  ;;  %s1054_s13 = smov [#allocation5]  }
   0xf   : > { %p1144_p8 = pnand %p709_p5, %p208_p7  ;;  %s221_s14 = sshll.u32 %s1054_s13, 4  ;;  %s222_s14 = int_to_ptr.vmem [resolvable:$true] %s221_s14 }
  0x10   : > { %s236_s18 = sshll.u32 %s1300_s3, 4  ;;  %s1305_s19 = smov 128   ;;  %s237_s18 = int_to_ptr.hbm [resolvable:$true] %s236_s18 }
  0x11   : > { %p766_p9 = pneg %p1144_p8  ;;  %s1306_s20 = smov 8  }
  0x12   : > { %s1057_s21 = smov [#allocation7]   ;;  %s253_s9 = sshll.u32 %s1302_s5, 4  ;;  %s254_s9 = int_to_ptr.hbm [resolvable:$true] %s253_s9 }
  0x13   : > { %p1152_p10 = pnand %p766_p9, %p46_p1  ;;  %s238_s22 = sshll.u32 %s1057_s21, 4  ;;  %s239_s22 = int_to_ptr.vmem [resolvable:$true] %s238_s22 }
  0x14   : > { %s219_s11 = sshll.u32 %s1310_s1, 4  ;;  %s1058_s10 = smov [#allocation8]   ;;  %s220_s11 = int_to_ptr.hbm [resolvable:$true] %s219_s11 }
  0x15   : > { %769 = dma.hbm_to_vmem [thread:$0]  (!%p1152_p10), %s220_s11, 2048, %s222_s14, [#allocation6], %s1305_s19, %s1305_s19, %s1306_s20  }
  0x16   : > { %772 = dma.hbm_to_vmem [thread:$0]  (!%p1152_p10), %s237_s18, 2048, %s239_s22, [#allocation6], %s1305_s19, %s1305_s19, %s1306_s20  }
  0x17   : > { %s255_s11 = sshll.u32 %s1058_s10, 4  ;;  %s1174_s13 = sadd.s32 1, %s1052_s27   ;;  %s256_s11 = int_to_ptr.vmem [resolvable:$true] %s255_s11 }
  0x18   : > { %775 = dma.hbm_to_vmem [thread:$0]  (!%p1152_p10), %s254_s9, 2048, %s256_s11, [#allocation9], %s1305_s19, %s1305_s19, %s1306_s20  }
  0x19   : > { %s29_s14 = ssub.s32 %s1052_s27, %s1174_s13  ;;  %s32_s16 = sadd.s32 1, %s1048_s26 }
  0x1a   : > { %p30_p12 = scmp.eq.s32.totalorder %s29_s14, 0  ;;  %p39_p13 = scmp.ne.s32.totalorder %s1048_s26, %s1044_s25 }
  0x1b   : > { %p40_p0 = scmp.eq.s32.totalorder %s1052_s27, 0  ;;  %p787_p5 = scmp.lt.s32.totalorder %s1052_s27, 2 }
  0x1c   : > { %s1188_s17 = scalar_select %p30_p12, %s1048_s26, %s32_s16  }
  0x1d   : > { %p1192_p3 = por %p195_p2, %p39_p13  ;;  %s272_s21 = sand.u32 1, %s1048_s26  }
  0x1e   : > { %s732_s15 = sshll.u32 %s1052_s27, 5  ;;  %p41_p7 = por %p40_p0, %p39_p13 }
  0x1f   : > { %s714_s22 = sshll.u32 %s272_s21, 5  ;;  %s281_s9 = scalar_lea.hbm %s1297_s0, %s732_s15 }
  0x20   : > { %s282_s10 = sshll.u32 %s281_s9, 4  ;;  %s276_s11 = scalar_lea.vmem [#allocation2], %s714_s22  ;;  %s283_s10 = int_to_ptr.hbm [resolvable:$true] %s282_s10 }
  0x21   : > { %s284_s14 = sshll.u32 %s276_s11, 4  ;;  %p1202_p9 = pnand %p787_p5, %p41_p7  ;;  %s285_s14 = int_to_ptr.vmem [resolvable:$true] %s284_s14 }
  0x22   : > { %s273_s19 = scalar_lea.sflag [#allocation3], %s272_s21  ;;  %s948_s20 = sshra.s32 %s283_s10, 4  ;;  %s949_s20 = int_to_ptr.hbm [resolvable:$true] %s948_s20 }
  0x23   : > { %s950_s1 = scalar_lea.hbm %s949_s20, 32  ;;  %p952_p10 = pneg %p1202_p9 }
  0x24   : > { %p951_p2 = scmp.ne.s32.totalorder %s949_s20, %s950_s1  ;;  %s955_s22 = scalar_lea.hbm %s1297_s0, 64 }
  0x25   : > { %p956_p0 = scmp.lt.s32.totalorder %s949_s20, %s1297_s0  ;;  %p957_p5 = scmp.lt.s32.totalorder %s955_s22, %s950_s1 }
  0x26   : > { %p953_p12 = pnand %p952_p10, %p951_p2 }
  0x27   : > { %p958_p7 = por %p957_p5, %p956_p0 }
  0x28   : > { %p954_p13 = pneg %p953_p12 }
  0x2a   : > { %p959_p11 = pnand %p958_p7, %p954_p13 }
  0x2c   : > { %962 = shalt.err (!%p959_p11)
}
  0x2d   : > { %s1315_s21 = smov 8   ;;  %s1316_s11 = smov 128  }
  0x2e   : > { %779 = dma.hbm_to_vmem [thread:$0]  (!%p1202_p9), %s283_s10, 512, %s285_s14, %s273_s19, %s1316_s11, %s1316_s11, %s1315_s21  }
  0x2f   : > { %296 = sbr.rel (%p1144_p8) target bundleno = 544 (0x220), region = 48  ;;  %s1222_s15 = sand.u32 (!%p1144_p8), 1, %s1044_s25  }
  0x30   : > { %s718_s1 = sshll.u32 (!%p1144_p8), %s1222_s15, 5  ;;  %s299_s20 = scalar_lea.sflag (!%p1144_p8), [#allocation3], %s1222_s15 }
  0x31   : > { %s1228_s23 = scalar_lea.vmem (!%p1144_p8), [#allocation2], %s718_s1 }
  0x34   : > { %1023 = dma.done.wait (%p1131_p4), %s299_s20, 512  }
  0x35   : > { %1025 = vsyncadd (%p1131_p4), %s299_s20, 4294966784 }
  0x36   : > { %1027 = dma.done.wait (%p46_p1), [#allocation6], 4096  }
  0x37   : > { %1029 = vsyncadd (%p46_p1), [#allocation6], 4294963200 }
  0x38   : > { %1031 = dma.done.wait (%p46_p1), [#allocation9], 2048  }
  0x39   : > { %1033 = vsyncadd (%p46_p1), [#allocation9], 4294965248  ;;  %v370_v0 = vld [vmem:[#allocation5 + $0x78] sm:$0xff]  ;;  %v369_v1 = vld [vmem:[#allocation5 + $0x70] sm:$0xff]  ;;  %s1257_s22 = scalar_lea.vmem [#allocation10], %s718_s1  ;;  %s733_s29 = sshll.u32 %s1122_s28, 5 }
  0x3a   : > { %375 = vmatpush.msra.mxu0 %v370_v0  ;;  %734 = vmatpush.msra.mxu3 %v370_v0  ;;  %v368_v2 = vld [vmem:[#allocation5 + $0x68] sm:$0xff]  ;;  %v367_v3 = vld [vmem:[#allocation5 + $0x60] sm:$0xff]  ;;  %v366_v4 = vld [vmem:[#allocation5 + $0x58] sm:$0xff]  ;;  %s602_s11 = scalar_lea.hbm %s1304_s7, %s733_s29  ;;  %s603_s28 = sshll.u32 %s1257_s22, 4  ;;  %s604_s28 = int_to_ptr.vmem [resolvable:$true] %s603_s28 }
  0x3b   : > { %v365_v5 = vld [vmem:[#allocation5 + $0x50] sm:$0xff]  ;;  %v364_v6 = vld [vmem:[#allocation5 + $0x48] sm:$0xff]  ;;  %v363_v7 = vld [vmem:[#allocation5 + $0x40] sm:$0xff]  ;;  %s605_s1 = sshll.u32 %s602_s11, 4  ;;  %s591_s20 = scalar_lea.sflag [#allocation4], %s1222_s15  ;;  %s606_s1 = int_to_ptr.hbm [resolvable:$true] %s605_s1 }
  0x3c   : > { %376 = vmatpush.msra.mxu0 %v369_v1  ;;  %735 = vmatpush.msra.mxu3 %v369_v1  ;;  %v362_v8 = vld [vmem:[#allocation5 + $0x38] sm:$0xff]  ;;  %v361_v9 = vld [vmem:[#allocation5 + $0x30] sm:$0xff]  ;;  %v360_v12 = vld [vmem:[#allocation5 + $0x28] sm:$0xff]  ;;  %s998_s10 = scalar_lea.hbm %s1304_s7, 64 }
  0x3d   : > { %v423_v10 = vld [vmem:[#allocation7 + $0x78] sm:$0xff]  ;;  %v422_v11 = vld [vmem:[#allocation7 + $0x70] sm:$0xff]  ;;  %v421_v13 = vld [vmem:[#allocation7 + $0x68] sm:$0xff] }
  0x3e   : > { %377 = vmatpush.msra.mxu0 %v368_v2  ;;  %736 = vmatpush.msra.mxu3 %v368_v2  ;;  %v359_v14 = vld [vmem:[#allocation5 + $0x20] sm:$0xff]  ;;  %v358_v16 = vld [vmem:[#allocation5 + $0x18] sm:$0xff]  ;;  %v357_v18 = vld [vmem:[#allocation5 + $0x10] sm:$0xff] }
  0x3f   : > { %428 = vmatpush.msra.mxu1 %v423_v10  ;;  %v420_v15 = vld [vmem:[#allocation7 + $0x60] sm:$0xff]  ;;  %v419_v17 = vld [vmem:[#allocation7 + $0x58] sm:$0xff]  ;;  %v418_v19 = vld [vmem:[#allocation7 + $0x50] sm:$0xff] }
  0x40   : > { %378 = vmatpush.msra.mxu0 %v367_v3  ;;  %737 = vmatpush.msra.mxu3 %v367_v3  ;;  %v356_v20 = vld [vmem:[#allocation5 + $0x8] sm:$0xff]  ;;  %v355_v22 = vld [vmem:[#allocation5] sm:$0xff]  ;;  %v415_v26 = vld [vmem:[#allocation7 + $0x38] sm:$0xff] }
  0x41   : > { %429 = vmatpush.msra.mxu1 %v422_v11  ;;  %v417_v21 = vld [vmem:[#allocation7 + $0x48] sm:$0xff]  ;;  %v351_v23 = vld [vmem:[%s1228_s23] sm:$0xff]  ;;  %v414_v27 = vld [vmem:[#allocation7 + $0x30] sm:$0xff] }
  0x42   : > { %379 = vmatpush.msra.mxu0 %v366_v4  ;;  %738 = vmatpush.msra.mxu3 %v366_v4  ;;  %v352_v24 = vld [vmem:[%s1228_s23 + $0x8] sm:$0xff]  ;;  %v416_v25 = vld [vmem:[#allocation7 + $0x40] sm:$0xff]  ;;  %v353_v29 = vld [vmem:[%s1228_s23 + $0x10] sm:$0xff] }
  0x43   : > { %430 = vmatpush.msra.mxu1 %v421_v13  ;;  %v413_v28 = vld [vmem:[#allocation7 + $0x28] sm:$0xff]  ;;  %v412_v30 = vld [vmem:[#allocation7 + $0x20] sm:$0xff]  ;;  %v411_v31 = vld [vmem:[#allocation7 + $0x18] sm:$0xff] }
  0x44   : > { %380 = vmatpush.msra.mxu0 %v365_v5  ;;  %739 = vmatpush.msra.mxu3 %v365_v5  ;;  %v354_v32 = vld [vmem:[%s1228_s23 + $0x18] sm:$0xff]  ;;  %v410_v33 = vld [vmem:[#allocation7 + $0x10] sm:$0xff]  ;;  %v409_v34 = vld [vmem:[#allocation7 + $0x8] sm:$0xff]  ;;  %s992_s23 = sshra.s32 %s606_s1, 4  ;;  %s993_s23 = int_to_ptr.hbm [resolvable:$true] %s992_s23 }
  0x45   : > { %431 = vmatpush.msra.mxu1 %v420_v15  ;;  %v408_v35 = vld [vmem:[#allocation7] sm:$0xff]  ;;  %v476_v37 = vld [vmem:[#allocation8 + $0x78] sm:$0xff]  ;;  %v475_v38 = vld [vmem:[#allocation8 + $0x70] sm:$0xff]  ;;  %s994_s30 = scalar_lea.hbm %s993_s23, 32  ;;  %p999_p11 = scmp.lt.s32.totalorder %s993_s23, %s1304_s7 }
  0x46   : > { %381 = vmatpush.msra.mxu0 %v364_v6  ;;  %740 = vmatpush.msra.mxu3 %v364_v6  ;;  %v831_v36 = vld [vmem:[%s1299_s2] ss:$0 sm:$0xff]  ;;  %v474_v39 = vld [vmem:[#allocation8 + $0x68] sm:$0xff]  ;;  %v472_v44 = vld [vmem:[#allocation8 + $0x58] sm:$0xff]  ;;  %p995_p1 = scmp.ne.s32.totalorder %s993_s23, %s994_s30  ;;  %p1000_p9 = scmp.lt.s32.totalorder %s998_s10, %s994_s30 }
  0x47   : > { %432 = vmatpush.msra.mxu1 %v419_v17  ;;  %481 = vmatpush.msra.mxu2 %v476_v37  ;;  %v473_v42 = vld [vmem:[#allocation8 + $0x60] sm:$0xff]  ;;  %v471_v45 = vld [vmem:[#allocation8 + $0x50] sm:$0xff]  ;;  %v470_v48 = vld [vmem:[#allocation8 + $0x48] sm:$0xff] }
  0x48   : > { %382 = vmatpush.msra.mxu0 %v363_v7  ;;  %741 = vmatpush.msra.mxu3 %v363_v7  ;;  %v469_v50 = vld [vmem:[#allocation8 + $0x40] sm:$0xff]  ;;  %v468_v51 = vld [vmem:[#allocation8 + $0x38] sm:$0xff]  ;;  %v467_v52 = vld [vmem:[#allocation8 + $0x30] sm:$0xff]  ;;  %p996_p4 = pnand %p995_p1, %p1192_p3  ;;  %p1001_p2 = por %p1000_p9, %p999_p11 }
  0x49   : > { %433 = vmatpush.msra.mxu1 %v418_v19  ;;  %482 = vmatpush.msra.mxu2 %v475_v38  ;;  %v466_v55 = vld [vmem:[#allocation8 + $0x28] sm:$0xff]  ;;  %v465_v60 = vld [vmem:[#allocation8 + $0x20] sm:$0xff]  ;;  %v464_v61 = vld [vmem:[#allocation8 + $0x18] sm:$0xff] }
  0x4a   : > { %383 = vmatpush.msra.mxu0 %v362_v8  ;;  %742 = vmatpush.msra.mxu3 %v362_v8  ;;  %v463_v62 = vld [vmem:[#allocation8 + $0x10] sm:$0xff]  ;;  %v462_v63 = vld [vmem:[#allocation8 + $0x8] sm:$0xff]  ;;  %v461_v0 = vld [vmem:[#allocation8] sm:$0xff]  ;;  %p997_p8 = pneg %p996_p4 }
  0x4b   : > { %434 = vmatpush.msra.mxu1 %v417_v21  ;;  %483 = vmatpush.msra.mxu2 %v474_v39  ;;  %v832_v1 = vld [vmem:[%s1301_s4] ss:$0 sm:$0xff] }
  0x4c   : > { %384 = vmatpush.msra.mxu0 %v361_v9  ;;  %743 = vmatpush.msra.mxu3 %v361_v9  ;;  %p1002_p10 = pnand %p1001_p2, %p997_p8 }
  0x4d   : > { %435 = vmatpush.msra.mxu1 %v416_v25  ;;  %484 = vmatpush.msra.mxu2 %v473_v42 }
  0x4e   : > { %385 = vmatpush.msra.mxu0 %v360_v12  ;;  %744 = vmatpush.msra.mxu3 %v360_v12 }
  0x4f   : > { %436 = vmatpush.msra.mxu1 %v415_v26  ;;  %485 = vmatpush.msra.mxu2 %v472_v44 }
  0x50   : > { %386 = vmatpush.msra.mxu0 %v359_v14  ;;  %745 = vmatpush.msra.mxu3 %v359_v14  ;;  %v833_v14 = vld [vmem:[%s1303_s6] ss:$0 sm:$0xff] }
  0x51   : > { %437 = vmatpush.msra.mxu1 %v414_v27  ;;  %486 = vmatpush.msra.mxu2 %v471_v45 }
  0x52   : > { %387 = vmatpush.msra.mxu0 %v358_v16  ;;  %746 = vmatpush.msra.mxu3 %v358_v16 }
  0x53   : > { %438 = vmatpush.msra.mxu1 %v413_v28  ;;  %487 = vmatpush.msra.mxu2 %v470_v48 }
  0x54   : > { %388 = vmatpush.msra.mxu0 %v357_v18  ;;  %747 = vmatpush.msra.mxu3 %v357_v18 }
  0x55   : > { %439 = vmatpush.msra.mxu1 %v412_v30  ;;  %488 = vmatpush.msra.mxu2 %v469_v50 }
  0x56   : > { %389 = vmatpush.msra.mxu0 %v356_v20  ;;  %748 = vmatpush.msra.mxu3 %v356_v20 }
  0x57   : > { %440 = vmatpush.msra.mxu1 %v411_v31  ;;  %489 = vmatpush.msra.mxu2 %v468_v51 }
  0x58   : > { %390 = vmatpush.msra.mxu0 %v355_v22  ;;  %749 = vmatpush.msra.mxu3 %v355_v22 }
  0x59   : > { %391 = vmatmul.f32.vlgmr.msra.gmra.mxu0 %v351_v23  ;;  %394 = vmatmul.f32.vlgmr.msra.gmra.mxu3 %v352_v24 }
  0x5a   : > { %441 = vmatpush.msra.mxu1 %v410_v33  ;;  %490 = vmatpush.msra.mxu2 %v467_v52 }
  0x5c   : > { %442 = vmatpush.msra.mxu1 %v409_v34  ;;  %491 = vmatpush.msra.mxu2 %v466_v55 }
  0x5e   : > { %443 = vmatpush.msra.mxu1 %v408_v35  ;;  %492 = vmatpush.msra.mxu2 %v465_v60 }
  0x60   : > { %493 = vmatpush.msra.mxu2 %v464_v61 }
  0x61   : > { %397 = vmatmul.f32.gmra.mxu3 %v353_v29 }
  0x62   : > { %494 = vmatpush.msra.mxu2 %v463_v62 }
  0x64   : > { %495 = vmatpush.msra.mxu2 %v462_v63 }
  0x66   : > { %496 = vmatpush.msra.mxu2 %v461_v0 }
  0x69   : > { %400 = vmatmul.f32.gmra.mxu3 %v354_v32 }
  0xd6   : > { %v392_v40 = vpop.f32.mrf.mxu0 }
  0xd7   : > { %v393_v41 = vadd.f32 %v831_v36, %v392_v40 }
  0xd9   : > { %v404_v43 = vmax.f32 %v393_v41, 0.0 }
  0xdb   : > { %444 = vmatmul.f32.vlgmr.msra.gmra.mxu1 %v404_v43 }
  0xdc   : > { %v395_v46 = vpop.f32.mrf.mxu3 }
  0xdd   : > { %v396_v47 = vadd.f32 %v831_v36, %v395_v46 }
  0xdf   : > { %v405_v49 = vmax.f32 %v396_v47, 0.0 }
  0xe3   : > { %447 = vmatmul.f32.gmra.mxu1 %v405_v49 }
  0xe4   : > { %v398_v53 = vpop.f32.mrf.mxu3 }
  0xe5   : > { %v399_v54 = vadd.f32 %v831_v36, %v398_v53 }
  0xe7   : > { %v406_v56 = vmax.f32 %v399_v54, 0.0 }
  0xeb   : > { %450 = vmatmul.f32.gmra.mxu1 %v406_v56 }
  0xec   : > { %v401_v57 = vpop.f32.mrf.mxu3 }
  0xed   : > { %v402_v58 = vadd.f32 %v831_v36, %v401_v57 }
  0xef   : > { %v407_v59 = vmax.f32 %v402_v58, 0.0 }
  0xf3   : > { %453 = vmatmul.f32.gmra.mxu1 %v407_v59 }
 0x158   : > { %v445_v2 = vpop.f32.mrf.mxu1 }
 0x159   : > { %v446_v3 = vadd.f32 %v832_v1, %v445_v2 }
 0x15b   : > { %834 = vtanh.f32 %v446_v3 }
 0x160   : > { %v448_v4 = vpop.f32.mrf.mxu1 }
 0x161   : > { %v835_v5 = vpop.eup %834  ;;  %v449_v6 = vadd.f32 %v832_v1, %v448_v4 }
 0x162   : > { %497 = vmatmul.f32.vlgmr.msra.gmra.mxu2 %v835_v5 }
 0x163   : > { %836 = vtanh.f32 %v449_v6 }
 0x168   : > { %v451_v7 = vpop.f32.mrf.mxu1 }
 0x169   : > { %v837_v8 = vpop.eup %836  ;;  %v452_v9 = vadd.f32 %v832_v1, %v451_v7 }
 0x16a   : > { %500 = vmatmul.f32.gmra.mxu2 %v837_v8 }
 0x16b   : > { %838 = vtanh.f32 %v452_v9 }
 0x170   : > { %v454_v10 = vpop.f32.mrf.mxu1 }
 0x171   : > { %v839_v11 = vpop.eup %838  ;;  %v455_v12 = vadd.f32 %v832_v1, %v454_v10 }
 0x172   : > { %503 = vmatmul.f32.gmra.mxu2 %v839_v11 }
 0x173   : > { %840 = vtanh.f32 %v455_v12 }
 0x179   : > { %v841_v13 = vpop.eup %840 }
 0x17a   : > { %506 = vmatmul.f32.gmra.mxu2 %v841_v13 }
 0x1e5   : > { %v498_v15 = vpop.f32.mrf.mxu2 }
 0x1e6   : > { %v499_v16 = vadd.f32 %v833_v14, %v498_v15 }
 0x1e8   : > { %v723_v17 = vmul.f32 -1.442695, %v499_v16 }
 0x1ea   : > { %842 = vpow2.f32 %v723_v17 }
 0x1ed   : > { %v501_v18 = vpop.f32.mrf.mxu2 }
 0x1ee   : > { %v502_v19 = vadd.f32 %v833_v14, %v501_v18 }
 0x1f0   : > { %v843_v20 = vpop.eup %842  ;;  %v724_v21 = vmul.f32 -1.442695, %v502_v19 }
 0x1f1   : > { %v522_v22 = vadd.f32 1.0, %v843_v20 }
 0x1f2   : > { %844 = vpow2.f32 %v724_v21 }
 0x1f3   : > { %846 = vrcp.f32 %v522_v22  ;;  %v537_v31 = vand.u32 2147483648, %v522_v22  ;;  %v535_v34 = vand.u32 2147483647, %v522_v22  ;;  %vm531_vm1 = vweird.f32 %v522_v22 }
 0x1f5   : > { %v504_v23 = vpop.f32.mrf.mxu2  ;;  %v538_v40 = vor.u32 1.1754944e-38, %v537_v31  ;;  %vm536_vm3 = vcmp.eq.f32.partialorder %v535_v34, 8.507059e+37 }
 0x1f6   : > { %v505_v24 = vadd.f32 %v833_v14, %v504_v23 }
 0x1f8   : > { %v845_v25 = vpop.eup %844  ;;  %v725_v26 = vmul.f32 -1.442695, %v505_v24 }
 0x1f9   : > { %v847_v27 = vpop.eup %846  ;;  %v523_v28 = vadd.f32 1.0, %v845_v25 }
 0x1fa   : > { %v527_v29 = vmul.f32 %v847_v27, %v522_v22  ;;  %848 = vpow2.f32 %v725_v26  ;;  %vm532_vm0 = vweird.f32 %v847_v27 }
 0x1fb   : > { %850 = vrcp.f32 %v523_v28  ;;  %vm533_vm2 = vmor %vm531_vm1, %vm532_vm0  ;;  %v552_v46 = vand.u32 2147483648, %v523_v28  ;;  %v550_v48 = vand.u32 2147483647, %v523_v28  ;;  %vm546_vm5 = vweird.f32 %v523_v28 }
 0x1fc   : > { %v528_v30 = vsub.f32 1.0, %v527_v29 }
 0x1fd   : > { %v507_v32 = vpop.f32.mrf.mxu2  ;;  %v553_v52 = vor.u32 1.1754944e-38, %v552_v46  ;;  %vm551_vm7 = vcmp.eq.f32.partialorder %v550_v48, 8.507059e+37 }
 0x1fe   : > { %v529_v33 = vmul.f32 %v847_v27, %v528_v30  ;;  %v508_v35 = vadd.f32 %v833_v14, %v507_v32 }
 0x200   : > { %v849_v36 = vpop.eup %848  ;;  %v530_v37 = vadd.f32 %v847_v27, %v529_v33  ;;  %v726_v38 = vmul.f32 -1.442695, %v508_v35 }
 0x201   : > { %v851_v39 = vpop.eup %850  ;;  %v524_v41 = vadd.f32 1.0, %v849_v36 }
 0x202   : > { %v534_v42 = vsel %vm533_vm2, %v847_v27, %v530_v37  ;;  %v542_v43 = vmul.f32 %v851_v39, %v523_v28  ;;  %852 = vpow2.f32 %v726_v38  ;;  %vm547_vm4 = vweird.f32 %v851_v39 }
 0x203   : > { %v539_v44 = vsel %vm536_vm3, %v538_v40, %v534_v42  ;;  %854 = vrcp.f32 %v524_v41  ;;  %vm548_vm6 = vmor %vm546_vm5, %vm547_vm4  ;;  %v567_v58 = vand.u32 2147483648, %v524_v41  ;;  %v565_v60 = vand.u32 2147483647, %v524_v41 }
 0x204   : > { %586 = vst [vmem:[%s1257_s22] sm:$0xff] %v539_v44  ;;  %v543_v45 = vsub.f32 1.0, %v542_v43  ;;  %vm561_vm9 = vweird.f32 %v524_v41 }
 0x205   : > { %v568_v63 = vor.u32 1.1754944e-38, %v567_v58  ;;  %vm566_vm11 = vcmp.eq.f32.partialorder %v565_v60, 8.507059e+37 }
 0x206   : > { %v544_v47 = vmul.f32 %v851_v39, %v543_v45 }
 0x208   : > { %v853_v49 = vpop.eup %852  ;;  %v545_v50 = vadd.f32 %v851_v39, %v544_v47 }
 0x209   : > { %v855_v51 = vpop.eup %854  ;;  %v525_v53 = vadd.f32 1.0, %v853_v49 }
 0x20a   : > { %v549_v54 = vsel %vm548_vm6, %v851_v39, %v545_v50  ;;  %v557_v55 = vmul.f32 %v855_v51, %v524_v41  ;;  %vm562_vm8 = vweird.f32 %v855_v51 }
 0x20b   : > { %v554_v56 = vsel %vm551_vm7, %v553_v52, %v549_v54  ;;  %856 = vrcp.f32 %v525_v53  ;;  %vm563_vm10 = vmor %vm561_vm9, %vm562_vm8  ;;  %v582_v4 = vand.u32 2147483648, %v525_v53  ;;  %v580_v6 = vand.u32 2147483647, %v525_v53 }
 0x20c   : > { %587 = vst [vmem:[%s1257_s22 + $0x8] sm:$0xff] %v554_v56  ;;  %v558_v57 = vsub.f32 1.0, %v557_v55  ;;  %vm576_vm13 = vweird.f32 %v525_v53 }
 0x20d   : > { %v583_v8 = vor.u32 1.1754944e-38, %v582_v4  ;;  %vm581_vm15 = vcmp.eq.f32.partialorder %v580_v6, 8.507059e+37 }
 0x20e   : > { %v559_v59 = vmul.f32 %v855_v51, %v558_v57 }
 0x210   : > { %v560_v61 = vadd.f32 %v855_v51, %v559_v59 }
 0x211   : > { %v857_v62 = vpop.eup %856 }
 0x212   : > { %v564_v0 = vsel %vm563_vm10, %v855_v51, %v560_v61  ;;  %v572_v1 = vmul.f32 %v857_v62, %v525_v53  ;;  %vm577_vm12 = vweird.f32 %v857_v62 }
 0x213   : > { %v569_v2 = vsel %vm566_vm11, %v568_v63, %v564_v0  ;;  %vm578_vm14 = vmor %vm576_vm13, %vm577_vm12 }
 0x214   : > { %588 = vst [vmem:[%s1257_s22 + $0x10] sm:$0xff] %v569_v2  ;;  %v573_v3 = vsub.f32 1.0, %v572_v1 }
 0x216   : > { %v574_v5 = vmul.f32 %v857_v62, %v573_v3 }
 0x218   : > { %v575_v7 = vadd.f32 %v857_v62, %v574_v5 }
 0x21a   : > { %v579_v9 = vsel %vm578_vm14, %v857_v62, %v575_v7 }
 0x21b   : > { %v584_v10 = vsel %vm581_vm15, %v583_v8, %v579_v9 }
 0x21c   : > { %589 = vst [vmem:[%s1257_s22 + $0x18] sm:$0xff] %v584_v10 }
 0x21d   : > { %1005 = shalt.err (!%p1002_p10)
}
 0x21e   : > { %s1059_s15 = smov 128   ;;  %s1060_s22 = smov 8  }
 0x21f   : > { %764 = dma.vmem_to_hbm [thread:$0]  (%p1192_p3), %s604_s28, 512, %s606_s1, %s591_s20, %s1059_s15, %s1059_s15, %s1060_s22  }
 0x220 PF: > { %s620_s29 = sand.u32 1, %s1040_s24   ;;  %p1317_p12 = scmp.ge.s32.totalorder %s1052_s27, 2 }
 0x221   : > { %s621_s9 = scalar_lea.sflag [#allocation4], %s620_s29 }
 0x222   : > { %p781_p13 = pnand %p1317_p12, %p1136_p6 }
 0x224   : > { %p782_p0 = pneg %p781_p13 }
 0x226   : > { %1035 = dma.done.wait (%p782_p0), %s621_s9, 512  }
 0x227   : > { %1037 = vsyncadd (%p782_p0), %s621_s9, 4294966784  ;;  %p22_p5 = scmp.ge.s32.totalorder %s1174_s13, 4   ;;  %s1318_s24 = smov %s1044_s25 }
 0x228   : > { %s1319_s25 = smov %s1048_s26  ;;  %s1320_s26 = smov %s1188_s17 }
 0x229   : > { %s1321_s27 = smov %s1174_s13  ;;  %24 = sbr.rel (!%p22_p5) target bundleno = 9 (0x9), region = 105 }
 0x22e   :  { %627 = vsyncpa [#allocation3], 1 }
 0x22f   :  { %629 = vsyncpa [#allocation3 + $0x1], 1 }
 0x230   :  { %630 = vsyncpa [#allocation6], 1 }
 0x231   :  { %631 = vsyncpa [#allocation9], 1 }
 0x232   :  { %632 = vsyncpa [#allocation4], 1 }
 0x233   :  { %634 = vsyncpa [#allocation4 + $0x1], 1 }

</bundles_post_ra>
